<compile_context>
chip_gen: v7x
topology: tpu7x:2x2x1
jax: 0.10.0
libtpu: 0.0.40
codegen_flags: <defaults>
</compile_context>

<pallas_src>
import functools

import jax
import jax.numpy as jnp
from jax.experimental import pallas as pl
from jax.experimental.pallas import tpu as pltpu


def _causal_conv_kernel(x_ref, w_ref, b_ref, o_ref, scr_ref, *,
                        dilation, kernel_size, l_tile):
    # x_ref:   (1, Cin, l_tile)     current L-tile (NCL layout, L on lanes)
    # w_ref:   (Cout, K*Cin)        weight-normalized taps, column = k*Cin + ci
    # b_ref:   (Cout, 1) f32        bias
    # o_ref:   (1, Cout, l_tile)
    # scr_ref: (Cin, padding)       causal carry: last `padding` time-steps seen
    K = kernel_size
    padding = (K - 1) * dilation

    x_cur = x_ref[0]                                          # (Cin, l_tile)

    if padding > 0:
        # Global time of each scratch column; columns before t=0 are invalid
        # (uninitialized scratch on the first L-tile of each sequence) -> zero,
        # which reproduces the causal left zero-padding of the reference.
        t0 = pl.program_id(1) * l_tile
        scr_t = (t0 - padding) + jax.lax.broadcasted_iota(jnp.int32, (1, padding), 1)
        scr = jnp.where(scr_t >= 0, scr_ref[...], 0)          # (Cin, padding)
        xcat = jnp.concatenate([scr, x_cur], axis=-1)         # (Cin, padding + l_tile)
        # Carry the trailing `padding` time-steps into the next L-tile.
        scr_ref[...] = xcat[:, l_tile:]
    else:
        xcat = x_cur

    taps = []
    for k in range(K):                                        # static unroll, K is tiny
        shift = (K - 1 - k) * dilation                        # how far back tap k reaches
        taps.append(xcat[:, padding - shift: padding - shift + l_tile])
    xg = taps[0] if K == 1 else jnp.concatenate(taps, axis=0)  # (K*Cin, l_tile)

    # Single folded matmul: contraction over K*Cin, lane-dense N = l_tile.
    acc = jnp.dot(w_ref[...], xg, preferred_element_type=jnp.float32)  # (Cout, l_tile)
    acc = acc + b_ref[...]                                    # (Cout, 1) broadcast over lanes
    out = jnp.maximum(acc, 0.01 * acc)                        # LeakyReLU (slope 0.01)
    o_ref[0] = out.astype(o_ref.dtype)


def causal_convolution(x_ncl, v, g, bias, *, dilation, l_tile=None):
    """Forward pass of CausalConvolution.

    Args:
      x_ncl: (B, Cin, L) input, same axis convention as the PyTorch module.
      v:     (Cout, Cin, K) weight_norm "v" parameter.
      g:     (Cout,)        weight_norm "g" parameter.
      bias:  (Cout,)        conv bias.
      dilation: kernel dilation.
      l_tile: optional explicit L-tile size (multiple of 128, or >= L).

    Returns:
      (B, Cout, L) tensor.
    """
    B, Cin, L = x_ncl.shape
    Cout, _, K = v.shape
    padding = (K - 1) * dilation

    # weight_norm (dim=0): w = g * v / ||v||, norm per output channel (in f32).
    v32 = v.astype(jnp.float32)
    norm = jnp.sqrt(jnp.sum(v32 * v32, axis=(1, 2), keepdims=True))
    w = g.astype(jnp.float32)[:, None, None] * v32 / norm             # (Cout, Cin, K)
    # Fold the K taps into the contraction dim: column index = k*Cin + ci.
    w2 = jnp.transpose(w, (0, 2, 1)).reshape(Cout, K * Cin).astype(x_ncl.dtype)
    b2 = bias.reshape(Cout, 1).astype(jnp.float32)

    # ---- L-tile choice -----------------------------------------------------
    # L maps to the lane axis; tiles are multiples of 128 lanes (or all of L).
    # Sized so double-buffered in/out blocks + f32 accumulator stay well inside
    # the scoped-VMEM limit on all of v5e/v6e/v7x.
    if l_tile is None:
        if L <= 512:
            l_tile = L
        else:
            itemsize = jnp.dtype(x_ncl.dtype).itemsize
            per_col = 2 * Cin * itemsize + 2 * Cout * itemsize + Cout * 4
            budget = 8 * 1024 * 1024
            l_tile = max(512, min(2048, (budget // max(per_col, 1)) // 128 * 128))
            if l_tile >= L:
                l_tile = L
    l_tile = min(l_tile, L)
    n_l = pl.cdiv(L, l_tile)

    kernel = functools.partial(
        _causal_conv_kernel, dilation=dilation, kernel_size=K, l_tile=l_tile)

    return pl.pallas_call(
        kernel,
        out_shape=jax.ShapeDtypeStruct((B, Cout, L), x_ncl.dtype),
        grid=(B, n_l),
        in_specs=[
            # current L-tile (input is fetched from HBM exactly once)
            pl.BlockSpec((1, Cin, l_tile), lambda b, l: (b, 0, l)),
            # small VMEM-resident operands (constant block index -> no re-fetch)
            pl.BlockSpec((Cout, K * Cin), lambda b, l: (0, 0)),
            pl.BlockSpec((Cout, 1), lambda b, l: (0, 0)),
        ],
        out_specs=pl.BlockSpec((1, Cout, l_tile), lambda b, l: (b, 0, l)),
        scratch_shapes=[
            # causal carry: last `padding` time-steps, persists across L-tiles
            pltpu.VMEM((Cin, max(padding, 1)), x_ncl.dtype),
        ],
        compiler_params=pltpu.CompilerParams(
            # batch is megacore-parallel; L must run in order for the carry.
            dimension_semantics=("parallel", "arbitrary"),
            vmem_limit_bytes=32 * 1024 * 1024,
        ),
    )(x_ncl, w2, b2)


def _reference_forward(x_ncl, v, g, bias, *, dilation):
    """Pure-JAX reference mirroring the PyTorch module."""
    Cout, Cin, K = v.shape
    padding = (K - 1) * dilation
    norm = jnp.sqrt(jnp.sum(v ** 2, axis=(1, 2), keepdims=True))
    w = g[:, None, None] * v / norm
    xp = jnp.pad(x_ncl, ((0, 0), (0, 0), (padding, 0)))
    out = jax.lax.conv_general_dilated(
        xp, w, window_strides=(1,), padding="VALID", rhs_dilation=(dilation,),
        dimension_numbers=("NCH", "OIH", "NCH"))
    out = out + bias[None, :, None]
    return jnp.where(out >= 0, out, 0.01 * out)


if __name__ == "__main__":
    def run_case(batch, cin, cout, ksz, dil, seqlen, l_tile=None):
        key = jax.random.PRNGKey(0)
        kx, kv, kg, kb = jax.random.split(key, 4)
        x = jax.random.normal(kx, (batch, cin, seqlen), dtype=jnp.float32)
        v = jax.random.normal(kv, (cout, cin, ksz), dtype=jnp.float32)
        g = jax.random.normal(kg, (cout,), dtype=jnp.float32)
        b = jax.random.normal(kb, (cout,), dtype=jnp.float32)

        out = jax.block_until_ready(
            causal_convolution(x, v, g, b, dilation=dil, l_tile=l_tile))
        ref = _reference_forward(x, v, g, b, dilation=dil)
        assert out.shape == (batch, cout, seqlen)
        assert jnp.allclose(out, ref, atol=1e-5, rtol=1e-5), "mismatch vs reference"

    # Small config matching the module's forward contract.
    run_case(batch=2, cin=4, cout=8, ksz=3, dil=2, seqlen=16)
    # Multi-tile path: cross-tile causal carry through the VMEM scratch.
    run_case(batch=2, cin=4, cout=8, ksz=3, dil=3, seqlen=1024, l_tile=256)
    # Receptive field longer than one L-tile (padding > l_tile).
    run_case(batch=2, cin=4, cout=8, ksz=3, dil=96, seqlen=512, l_tile=128)

    print("KERNEL_OK")
</pallas_src>

<mosaic_0001>
module attributes {stable_mosaic.version = 11 : i64} {
  func.func @_causal_conv_kernel(%arg0: i32, %arg1: i32, %arg2: memref<1x4x16xf32, #tpu.memory_space<vmem>>, %arg3: memref<8x12xf32, #tpu.memory_space<vmem>>, %arg4: memref<8x1xf32, #tpu.memory_space<vmem>>, %arg5: memref<1x8x16xf32, #tpu.memory_space<vmem>>, %arg6: memref<4x4xf32, #tpu.memory_space<vmem>>) attributes {dimension_semantics = [#tpu.dimension_semantics<parallel>, #tpu.dimension_semantics<arbitrary>], iteration_bounds = array<i64: 2, 1>, scalar_prefetch = 0 : i64, scratch_operands = 1 : i64, tpu.core_type = #tpu.core_type<tc>, window_params = [{transform_indices = @transform_0, window_bounds = array<i64: 1, 4, 16>}, {pipeline_mode = #tpu.pipeline_mode<synchronous>, transform_indices = @transform_1, window_bounds = array<i64: 8, 12>}, {pipeline_mode = #tpu.pipeline_mode<synchronous>, transform_indices = @transform_2, window_bounds = array<i64: 8, 1>}, {transform_indices = @transform_3, window_bounds = array<i64: 1, 8, 16>}]} {
    %c0 = arith.constant 0 : index
    %c0_0 = arith.constant 0 : index
    %c0_1 = arith.constant 0 : index
    %0 = vector.load %arg2[%c0, %c0_0, %c0_1] : memref<1x4x16xf32, #tpu.memory_space<vmem>>, vector<1x4x16xf32>
    %1 = vector.shape_cast %0 : vector<1x4x16xf32> to vector<4x16xf32>
    %c16_i32 = arith.constant 16 : i32
    %2 = arith.muli %arg1, %c16_i32 : i32
    %c4_i32 = arith.constant 4 : i32
    %3 = arith.subi %2, %c4_i32 : i32
    %4 = tpu.iota {dimensions = array<i32: 1>} : vector<1x4xi32>
    %5 = vector.broadcast %3 : i32 to vector<1x4xi32>
    %6 = arith.addi %5, %4 : vector<1x4xi32>
    %c0_i32 = arith.constant 0 : i32
    %7 = vector.broadcast %c0_i32 : i32 to vector<1x4xi32>
    %8 = arith.cmpi sge, %6, %7 : vector<1x4xi32>
    %c0_2 = arith.constant 0 : index
    %c0_3 = arith.constant 0 : index
    %9 = vector.load %arg6[%c0_2, %c0_3] : memref<4x4xf32, #tpu.memory_space<vmem>>, vector<4x4xf32>
    %c0_i32_4 = arith.constant 0 : i32
    %10 = arith.sitofp %c0_i32_4 : i32 to f32
    %11 = vector.shape_cast %8 : vector<1x4xi1> to vector<1x4xi1>
    %12 = vector.broadcast %11 : vector<1x4xi1> to vector<4x4xi1>
    %13 = vector.broadcast %10 : f32 to vector<4x4xf32>
    %14 = arith.select %12, %9, %13 : vector<4x4xi1>, vector<4x4xf32>
    %15 = tpu.concatenate %14, %1 in 1 : vector<4x4xf32>, vector<4x16xf32> -> vector<4x20xf32>
    %16 = vector.extract_strided_slice %15 {offsets = [0, 16], sizes = [4, 4], strides = [1, 1]} : vector<4x20xf32> to vector<4x4xf32>
    %c0_5 = arith.constant 0 : index
    %c0_6 = arith.constant 0 : index
    %17 = vector.load %arg6[%c0_5, %c0_6] : memref<4x4xf32, #tpu.memory_space<vmem>>, vector<4x4xf32>
    tpu.vector_store %arg6[%c0_5, %c0_6], %16 {strides = array<i32>} : memref<4x4xf32, #tpu.memory_space<vmem>>, vector<4x4xf32>,
    %18 = vector.extract_strided_slice %15 {offsets = [0, 0], sizes = [4, 16], strides = [1, 1]} : vector<4x20xf32> to vector<4x16xf32>
    %19 = vector.extract_strided_slice %15 {offsets = [0, 2], sizes = [4, 16], strides = [1, 1]} : vector<4x20xf32> to vector<4x16xf32>
    %20 = vector.extract_strided_slice %15 {offsets = [0, 4], sizes = [4, 16], strides = [1, 1]} : vector<4x20xf32> to vector<4x16xf32>
    %21 = tpu.concatenate %18, %19, %20 in 0 : vector<4x16xf32>, vector<4x16xf32>, vector<4x16xf32> -> vector<12x16xf32>
    %c0_7 = arith.constant 0 : index
    %c0_8 = arith.constant 0 : index
    %22 = vector.load %arg3[%c0_7, %c0_8] : memref<8x12xf32, #tpu.memory_space<vmem>>, vector<8x12xf32>
    %cst = arith.constant dense<0.000000e+00> : vector<8x16xf32>
    %23 = tpu.matmul %22, %21, %cst {dimension_numbers = #tpu.dot_dimension_numbers<[1], [0], [0], [1], [0, 0, 1, 1], [], []>} : vector<8x12xf32>, vector<12x16xf32>, vector<8x16xf32> -> vector<8x16xf32>
    %c0_9 = arith.constant 0 : index
    %c0_10 = arith.constant 0 : index
    %24 = vector.load %arg4[%c0_9, %c0_10] : memref<8x1xf32, #tpu.memory_space<vmem>>, vector<8x1xf32>
    %25 = vector.broadcast %24 : vector<8x1xf32> to vector<8x16xf32>
    %26 = arith.addf %23, %25 : vector<8x16xf32>
    %cst_11 = arith.constant 0.00999999977 : f32
    %27 = vector.broadcast %cst_11 : f32 to vector<8x16xf32>
    %28 = arith.mulf %27, %26 : vector<8x16xf32>
    %29 = arith.maximumf %26, %28 : vector<8x16xf32>
    %c0_12 = arith.constant 0 : index
    %c0_13 = arith.constant 0 : index
    %c0_14 = arith.constant 0 : index
    %30 = vector.load %arg5[%c0_12, %c0_13, %c0_14] : memref<1x8x16xf32, #tpu.memory_space<vmem>>, vector<1x8x16xf32>
    %31 = vector.shape_cast %30 : vector<1x8x16xf32> to vector<8x16xf32>
    %32 = vector.shape_cast %29 : vector<8x16xf32> to vector<1x8x16xf32>
    tpu.vector_store %arg5[%c0_12, %c0_13, %c0_14], %32 {strides = array<i32>} : memref<1x8x16xf32, #tpu.memory_space<vmem>>, vector<1x8x16xf32>,
    return
  }
  func.func @transform_0(%arg0: i32, %arg1: i32) -> (i32, i32, i32) {
    %c0_i32 = arith.constant 0 : i32
    %c0_i32_0 = arith.constant 0 : i32
    return %arg0, %c0_i32, %arg1 : i32, i32, i32
  }
  func.func @transform_1(%arg0: i32, %arg1: i32) -> (i32, i32) {
    %c0_i32 = arith.constant 0 : i32
    %c0_i32_0 = arith.constant 0 : i32
    %c0_i32_1 = arith.constant 0 : i32
    return %c0_i32, %c0_i32_0 : i32, i32
  }
  func.func @transform_2(%arg0: i32, %arg1: i32) -> (i32, i32) {
    %c0_i32 = arith.constant 0 : i32
    %c0_i32_0 = arith.constant 0 : i32
    %c0_i32_1 = arith.constant 0 : i32
    return %c0_i32, %c0_i32_0 : i32, i32
  }
  func.func @transform_3(%arg0: i32, %arg1: i32) -> (i32, i32, i32) {
    %c0_i32 = arith.constant 0 : i32
    %c0_i32_0 = arith.constant 0 : i32
    return %arg0, %c0_i32, %arg1 : i32, i32, i32
  }
}

</mosaic_0001>

<bundles_post_ra>
// kernel: tpu_custom_call.1
= control target key start
LH: loop header
LB: loop body
LE: loop exit
PB: predicated region body
PF: predicated region fallthrough
CT: control target
= control target key end

     0   :  { %8 = vsyncpa [#allocation4], 0  ;;  %s823_s0 = inlined_call_operand.vmem [shape: f32[2,4,16], index: 0, kind: input, shape index: {}]   ;;  %s824_s1 = inlined_call_operand.hbm [shape: f32[8,12], index: 1, kind: input, shape index: {}]   ;;  %s825_s2 = inlined_call_operand.vmem [shape: f32[8,1], index: 2, kind: input, shape index: {}]   ;;  %s826_s3 = inlined_call_operand.hbm [shape: f32[2,8,16], index: 3, kind: output, shape index: {}]  }
   0x1   :  { %9 = vsyncpa [#allocation5], 0 }
   0x2   :  { %11 = vsyncpa [#allocation5 + $0x1], 0  ;;  %s670_s12 = smov 0   ;;  %s672_s13 = smov 0  }
   0x3   :  { %s674_s14 = smov 0   ;;  %s676_s15 = smov 0  }
   0x4   :  { %s678_s16 = smov 0   ;;  %s680_s17 = smov 0  }
   0x5 LB: > { %s421_s18 = sadd.s32 4294967295, %s637_s17   ;;  %s422_s19 = sadd.s32 4294967294, %s637_s17   ;;  %s637_s17 = sphi %s680_s17, %s17_s17   ;;  %s633_s16 = sphi %s678_s16, %s844_s16   ;;  %s629_s15 = sphi %s676_s15, %s843_s15   ;;  %s625_s14 = sphi %s674_s14, %s842_s14   ;;  %s621_s13 = sphi %s672_s13, %s841_s13   ;;  %s617_s12 = sphi %s670_s12, %s840_s12  }
   0x6   : > { %s29_s20 = sadd.s32 1, %s633_s16  ;;  %s108_s21 = sadd.s32 1, %s625_s14 }
   0x7   : > { %p31_p0 = scmp.ge.s32.totalorder %s29_s20, 2  ;;  %p118_p1 = scmp.ne.s32.totalorder %s625_s14, %s621_s13 }
   0x8   : > { %p119_p2 = scmp.eq.s32.totalorder %s421_s18, 1  ;;  %p124_p3 = scmp.ne.s32.totalorder %s621_s13, %s617_s12 }
   0x9   : > { %s846_s20 = smov (%p31_p0, %s29_s20), 0  ;;  %p125_p5 = scmp.eq.s32.totalorder %s422_s19, 1 }
   0xa   : > { %p710_p4 = por %p119_p2, %p118_p1  ;;  %s103_s23 = ssub.s32 %s633_s16, %s846_s20 }
   0xb   : > { %p423_p6 = scmp.ge.s32.totalorder %s637_s17, 1  ;;  %p106_p7 = scmp.eq.s32.totalorder %s103_s23, 0 }
   0xc   : > { %s831_s22 = scalar_select %p710_p4, 1, 0 }
   0xd   : > { %p717_p8 = por %p125_p5, %p124_p3  ;;  %p132_p9 = scmp.lt.s32.totalorder %s637_s17, 3 }
   0xe   : > { %s723_s25 = scalar_select %p106_p7, %s625_s14, %s108_s21  }
   0xf   : > { %s832_s24 = scalar_select %p717_p8, 1, 0 }
  0x10   : > { %p725_p10 = pnand %p423_p6, %p132_p9  ;;  %p729_p11 = scmp.eq.s32.totalorder %s421_s18, 0 }
  0x11   : > { %s639_s28 = smov [#allocation3]   ;;  %s527_s6 = scalar_lea.hbm %s824_s1, 128 }
  0x12   : > { %s833_s26 = scalar_select %p725_p10, 1, 0 }
  0x13   : > { %s834_s27 = scalar_select %p729_p11, 1, 0 }
  0x14   : > { %p456_p12 = pneg %p725_p10  ;;  %s145_s29 = sshll.u32 %s639_s28, 4  ;;  %s146_s29 = int_to_ptr.vmem [resolvable:$true] %s145_s29 }
  0x15   : > { %p528_p0 = scmp.ne.s32.totalorder %s824_s1, %s527_s6  ;;  %p534_p5 = scmp.lt.u32.totalorder %s527_s6, %s824_s1 }
  0x16   : > { %p737_p13 = pnand %p729_p11, %p456_p12 }
  0x18   : > { %p529_p1 = pneg %p737_p13 }
  0x1a   : > { %p530_p2 = pnand %p529_p1, %p528_p0 }
  0x1c   : > { %p531_p3 = pneg %p530_p2 }
  0x1e   : > { %p536_p6 = pnand %p534_p5, %p531_p3 }
  0x20   : > { %539 = shalt.err (!%p536_p6)
}
  0x21   : > { %s540_s11 = scalar_lea.vmem %s146_s29, 128  ;;  %p548_p8 = scmp.lt.s32.totalorder %s146_s29, %s146_s29 }
  0x22   : > { %p541_p7 = scmp.ne.s32.totalorder %s146_s29, %s540_s11  ;;  %p549_p4 = scmp.lt.s32.totalorder %s540_s11, %s540_s11 }
  0x24   : > { %p543_p9 = pnand %p541_p7, %p529_p1  ;;  %p550_p11 = por %p549_p4, %p548_p8 }
  0x26   : > { %p544_p12 = pneg %p543_p9 }
  0x28   : > { %p551_p10 = pnand %p550_p11, %p544_p12 }
  0x2a   : > { %554 = shalt.err (!%p551_p10)
}
  0x2b   : > { %459 = dma.hbm_to_vmem [thread:$0]  (!%p737_p13), %s824_s1, 128, %s146_s29, [#allocation4]  }
  0x2c   : > { %p836_p0 = scmp.ne.s32.totalorder %s833_s26, 0 }
  0x2d   : > { %p837_p2 = scmp.ne.s32.totalorder (!%p836_p0), %s834_s27, 0 }
  0x2e   : > { %171 = sbr.rel (%p836_p0) target bundleno = 532 (0x214), region = 32 }
  0x35   : > { %608 = dma.done.wait (%p837_p2), [#allocation4], 128  }
  0x36   : > { %610 = vsyncadd (%p837_p2), [#allocation4], 4294967168  ;;  %p197_p4 = scmp.lt.s32.totalorder %s629_s15, 1  ;;  %s640_s29 = smov 4   ;;  %v207_v1 = vlaneseq  ;;  %v641_v4 = vmov 0.0|0.0   ;;  %vm642_vm1 = vmmov 0  }
  0x37   : > { %446 = vmatprep.subr.bf16.mxu0 %v641_v4  ;;  %v212_v5 = vld [vmem:[#allocation2] sm:$0xf]  ;;  %v643_v6 = vmov 0.0   ;;  %vm220_vm2 = vcmask 31744   ;;  %v644_v8 = vmov 0   ;;  %s645_s26 = smov 124  }
  0x38   : > { %s198_s21 = scalar_select %p197_p4, %s629_s15, 1  ;;  %v208_v2 = vand.u32 127, %v207_v1  ;;  %443 = vmatprep.mubr.msk.f32.mxu0 %vm642_vm1, %v643_v6  ;;  %525 = vset.pattern.permute.xlu1 %v644_v8  ;;  %v237_v12 = vld [vmem:[%s825_s2] sm:$0xff]  ;;  %vm234_vm3 = vcmask 1043456   ;;  %vm648_vm4 = vmmov 1   ;;  %vm226_vm6 = vcmask 27648  }
  0x39   : > { %526 = vset.pattern.permute.xlu0 %v644_v8  ;;  %s646_s6 = smov 126   ;;  %s647_s7 = smov 112   ;;  %vm448_vm5 = vmpackc.low %vm234_vm3, %vm648_vm4  ;;  %v236_v18 = vld [vmem:[#allocation3] sm:$0xff]  ;;  %vm243_vm7 = vcmask 97280   ;;  %vm321_vm8 = vcmask 130048  }
  0x3a   : > { %s429_s23 = sshll.u32 %s198_s21, 2  ;;  %v210_v3 = vadd.s32 4294967292, %v208_v2  ;;  %s194_s8 = sand.u32 1, %s621_s13  }
  0x3b   : > { %s203_s4 = scalar_lea.vmem %s823_s0, %s429_s23  ;;  %s428_s9 = sshll.u32 %s194_s8, 3 }
  0x3c   : > { %v204_v0 = vld [vmem:[%s203_s4] sm:$0xf]  ;;  %vm211_vm0 = vcmp.ge.s32.totalorder %v210_v3, 0  ;;  %s433_s10 = sshll.u32 %s629_s15, 7  ;;  %s196_s11 = scalar_lea.vmem [#allocation6], %s428_s9 }
  0x3d   : > { %217 = vrot.lane.b32.xlu0 %v204_v0, %s640_s29  ;;  %v215_v7 = vsel %vm211_vm0, %v212_v5, 0.0  ;;  %s338_s18 = sshll.u32 %s196_s11, 4  ;;  %s776_s23 = scalar_lea.hbm %s826_s3, %s433_s10  ;;  %s778_s18 = int_to_ptr.vmem [resolvable:$true] %s338_s18 }
  0x3e   : > { %s324_s28 = scalar_lea.sflag [#allocation5], %s194_s8  ;;  %s555_s30 = scalar_lea.vmem %s778_s18, 128 }
  0x3f   : > { %p556_p8 = scmp.ne.s32.totalorder %s778_s18, %s555_s30  ;;  %p838_p10 = scmp.ne.s32.totalorder %s831_s22, 0 }
  0x40   : > { %s649_s15 = smov [#allocation6]  }
  0x41   : > { %p557_p11 = pnand %p556_p8, %p838_p10  ;;  %s559_s4 = sshll.u32 %s649_s15, 4  ;;  %s560_s4 = int_to_ptr.vmem [resolvable:$false] %s559_s4 }
  0x42   : > { %s561_s29 = scalar_lea.vmem %s560_s4, 256  ;;  %p562_p1 = scmp.lt.s32.totalorder %s778_s18, %s560_s4 }
  0x43   : > { %p558_p13 = pneg %p557_p11  ;;  %p563_p3 = scmp.lt.s32.totalorder %s561_s29, %s555_s30 }
  0x45   : > { %p564_p5 = por %p563_p3, %p562_p1 }
  0x47   : > { %p565_p6 = pnand %p564_p5, %p558_p13 }
  0xaf   : > { %v218_v9 = vpop.permute.xlu0 %217 }
  0xb0   : > { %v221_v10 = vsel %vm220_vm2, %v215_v7, %v218_v9 }
  0xb1   : > { %232 = vrot.lane.b32.xlu1 %v221_v10, %s645_s26  ;;  %v228_v11 = vrot.slane %v221_v10, 4 }
  0xb3   : > { %229 = vrot.lane.b32.xlu0 %v228_v11, %s646_s6 }
  0xb5   : > { %240 = vperm.xlu1 %525, %v237_v12  }
  0xb7   : > { %223 = vrot.lane.b32.xlu0 %v221_v10, %s647_s7 }
 0x123   : > { %v233_v14 = vpop.permute.xlu1 %232 }
 0x125   : > { %v230_v13 = vpop.permute.xlu0 %229 }
 0x126   : > { %v235_v15 = vsel %vm234_vm3, %v221_v10, %v230_v13 }
 0x127   : > { %v447_v16 = vpack.c.bf16 %v233_v14, %v235_v15 }
 0x129   : > { %449 = vmatpush3.bf16.msk.msra.mxu0 %vm448_vm5, %v447_v16  ;;  %v224_v17 = vpop.permute.xlu0 %223 }
 0x12a   : > { %227 = vst.msk [vmem:[#allocation2] sm:$0xf] %vm226_vm6, %v224_v17 }
 0x12c   : > { %444 = vmatmul.mubr.msk.f32.vlgmr.msra.gmra.mrb[0].mxu0 %vm243_vm7, %v236_v18 }
 0x134   : > { %v241_v19 = vpop.permute.xlu1 %240 }
 0x1ff   : > { %v315_v20 = vpop.f32.mrb[0].mxu0 }
 0x200   : > { %v316_v21 = vadd.f32 %v315_v20, %v241_v19  ;;  %v445_v22 = vpop.f32.mrb[1].mxu0 }
 0x202   : > { %v319_v23 = vmul.f32 0.01, %v316_v21 }
 0x204   : > { %v320_v24 = vmax.f32 %v316_v21, %v319_v23 }
 0x206   : > { %322 = vst.msk [vmem:[%s196_s11] sm:$0xff] %vm321_vm8, %v320_v24 }
 0x207   : > { %568 = shalt.err (!%p565_p6)
}
 0x208   : > { %s569_s26 = scalar_lea.hbm %s776_s23, 128  ;;  %s573_s6 = scalar_lea.hbm %s826_s3, 256 }
 0x209   : > { %p570_p7 = scmp.ne.s32.totalorder %s776_s23, %s569_s26  ;;  %p574_p0 = scmp.lt.u32.totalorder %s776_s23, %s826_s3 }
 0x20a   : > { %p575_p2 = scmp.lt.u32.totalorder %s573_s6, %s569_s26  ;;  %p577_p8 = scmp.lt.u32.totalorder %s569_s26, %s776_s23 }
 0x20b   : > { %p571_p9 = pnand %p570_p7, %p838_p10 }
 0x20c   : > { %p576_p4 = por %p575_p2, %p574_p0 }
 0x20d   : > { %p572_p12 = pneg %p571_p9 }
 0x20e   : > { %p578_p11 = por %p577_p8, %p576_p4 }
 0x210   : > { %p579_p13 = pnand %p578_p11, %p572_p12 }
 0x212   : > { %582 = shalt.err (!%p579_p13)
}
 0x213   : > { %454 = dma.vmem_to_hbm [thread:$0]  (%p838_p10), %s778_s18, 128, %s776_s23, %s324_s28  }
 0x214 PF: > { %p466_p1 = scmp.ge.s32.totalorder %s637_s17, 2  ;;  %s350_s9 = sand.u32 1, %s617_s12  }
 0x215   : > { %p839_p3 = scmp.ne.s32.totalorder %s832_s24, 0  ;;  %s351_s10 = scalar_lea.sflag [#allocation5], %s350_s9 }
 0x217   : > { %p461_p5 = pnand %p466_p1, %p839_p3 }
 0x219   : > { %612 = dma.done.wait (!%p461_p5), %s351_s10, 128  }
 0x21a   : > { %614 = vsyncadd (!%p461_p5), %s351_s10, 4294967168  ;;  %s17_s17 = sadd.s32 1, %s637_s17   ;;  %s840_s12 = smov %s621_s13 }
 0x21b   : > { %p14_p6 = scmp.ge.s32.totalorder %s17_s17, 4   ;;  %s841_s13 = smov %s625_s14 }
 0x21c   : > { %s842_s14 = smov %s723_s25  ;;  %s843_s15 = smov %s633_s16 }
 0x21d   : > { %s844_s16 = smov %s846_s20  ;;  %16 = sbr.rel (!%p14_p6) target bundleno = 5 (0x5), region = 72 }
 0x224   :  { %356 = vsyncpa [#allocation4], 1 }
 0x225   :  { %358 = vsyncpa [#allocation4 + $0x1], 1 }
 0x226   :  { %359 = vsyncpa [#allocation5], 1 }
 0x227   :  { %361 = vsyncpa [#allocation5 + $0x1], 1 }

</bundles_post_ra>
